<compile_context>
chip_gen: v7x
topology: tpu7x:2x2x1
jax: 0.10.0
libtpu: 0.0.40
codegen_flags: <defaults>
</compile_context>

<pallas_src>
import jax
import jax.numpy as jnp
from jax import lax
from jax.experimental import pallas as pl
from jax.experimental.pallas import tpu as pltpu


_BP = 8  # batch rows padded to one sublane tile


def _make_lstm_kernel(B, T, V, H):
    BP = _BP

    def kernel(tok_ref, embp_ref, whh_ref, out_ref):
        """Single-layer unidirectional LSTM (PyTorch gate order i, f, g, o).

        tok_ref  : [T*BP, 1] i32  time-major token ids, row (t, b) -> t*BP + b,
                                  padded rows (b >= B) hold -1
        embp_ref : [V, 4H] f32    emb_w @ W_ih^T + (b_ih + b_hh)
        whh_ref  : [H, 4H] bf16   W_hh^T
        out_ref  : [B, (T+1)*H]   lanes [t*H:(t+1)*H] = h_t, last H lanes = c_T
        """
        # ---- fused embedding gather + input projection: one MXU matmul ----
        ids = tok_ref[...]                                     # [T*BP, 1] i32
        iota_v = lax.broadcasted_iota(jnp.int32, (T * BP, V), 1)
        onehot = (iota_v == ids).astype(jnp.float32)           # pad rows -> all zero
        x_all = jnp.dot(onehot, embp_ref[...],
                        preferred_element_type=jnp.float32)    # [T*BP, 4H]

        whh = whh_ref[...]                                     # [H, 4H] bf16, hoisted

        # h / c live in vregs across the fully-unrolled recurrence.
        # Padded rows see x_t == 0 (no bias) and provably stay exactly 0.
        h = jnp.zeros((BP, H), jnp.float32)
        c = jnp.zeros((BP, H), jnp.float32)
        hs = []
        for t in range(T):                                     # T static -> full unroll
            x_t = x_all[t * BP:(t + 1) * BP, :]                # tile-aligned [BP, 4H]
            z = x_t + jnp.dot(h.astype(jnp.bfloat16), whh,
                              preferred_element_type=jnp.float32)   # [BP, 4H]
            # Two full-width EUP activations; gates via static lane slices.
            sig_z = jax.nn.sigmoid(z)
            tanh_z = jnp.tanh(z)
            i_g = sig_z[:, 0 * H:1 * H]
            f_g = sig_z[:, 1 * H:2 * H]
            g_g = tanh_z[:, 2 * H:3 * H]
            o_g = sig_z[:, 3 * H:4 * H]
            c = f_g * c + i_g * g_g
            h = o_g * jnp.tanh(c)
            hs.append(h)

        # Single lane-dense writeback: [h_0 | h_1 | ... | h_{T-1} | c_T].
        slab = jnp.concatenate(hs + [c], axis=1)               # [BP, (T+1)*H]
        out_ref[...] = slab[:B, :]

    return kernel


@jax.jit
def encoder_forward(x_tokens, emb_w, w_ih, w_hh, b_ih, b_hh):
    """Mirrors Encoder.forward: embedding -> LSTM -> (outputs, (h_n, c_n)).

    x_tokens : [B, T] int32 token ids
    emb_w    : [V, E]
    w_ih     : [4H, E]   (PyTorch layout, gate order i, f, g, o)
    w_hh     : [4H, H]
    b_ih,b_hh: [4H]
    """
    B, T = x_tokens.shape
    V, _E = emb_w.shape
    H = w_hh.shape[1]
    BP = _BP

    # Fold embedding table, input projection and both biases into one table.
    emb_proj = (emb_w @ w_ih.T + (b_ih + b_hh)[None, :]).astype(jnp.float32)  # [V, 4H]
    whh_bf = w_hh.T.astype(jnp.bfloat16)                                      # [H, 4H]

    # Time-major, sublane-padded token ids; -1 marks padding rows.
    tok_tm = x_tokens.T.astype(jnp.int32)                                     # [T, B]
    tok_pad = jnp.full((T, BP), -1, jnp.int32).at[:, :B].set(tok_tm)          # [T, BP]
    tok_col = tok_pad.reshape(T * BP, 1)                                      # [T*BP, 1]

    slab = pl.pallas_call(
        _make_lstm_kernel(B, T, V, H),
        out_shape=jax.ShapeDtypeStruct((B, (T + 1) * H), jnp.float32),
        in_specs=[
            pl.BlockSpec(memory_space=pltpu.MemorySpace.VMEM),
            pl.BlockSpec(memory_space=pltpu.MemorySpace.VMEM),
            pl.BlockSpec(memory_space=pltpu.MemorySpace.VMEM),
        ],
        out_specs=pl.BlockSpec(memory_space=pltpu.MemorySpace.VMEM),
    )(tok_col, emb_proj, whh_bf)

    outputs = slab[:, :T * H].reshape(B, T, H)        # batch_first, like nn.LSTM
    h_n = slab[:, (T - 1) * H:T * H][None, :, :]      # == outputs[:, -1, :]
    c_n = slab[:, T * H:][None, :, :]
    return outputs, (h_n, c_n)


def _reference_forward(x_tokens, emb_w, w_ih, w_hh, b_ih, b_hh):
    """Pure-JAX f32 reference (lax.scan) matching nn.Embedding + nn.LSTM."""
    B, T = x_tokens.shape
    H = w_hh.shape[1]
    embedded = jnp.take(emb_w, x_tokens, axis=0)            # [B, T, E]
    x_tm = jnp.transpose(embedded, (1, 0, 2))               # [T, B, E]

    def step(carry, x_t):
        h, c = carry
        z = x_t @ w_ih.T + h @ w_hh.T + b_ih + b_hh
        i_g = jax.nn.sigmoid(z[:, 0 * H:1 * H])
        f_g = jax.nn.sigmoid(z[:, 1 * H:2 * H])
        g_g = jnp.tanh(z[:, 2 * H:3 * H])
        o_g = jax.nn.sigmoid(z[:, 3 * H:4 * H])
        c_new = f_g * c + i_g * g_g
        h_new = o_g * jnp.tanh(c_new)
        return (h_new, c_new), h_new

    h0 = jnp.zeros((B, H), jnp.float32)
    c0 = jnp.zeros((B, H), jnp.float32)
    (h_n, c_n), outs_tm = lax.scan(step, (h0, c0), x_tm)
    return jnp.transpose(outs_tm, (1, 0, 2)), (h_n[None], c_n[None])


if __name__ == "__main__":
    # --- config (matches Encoder(__init__) shapes) ---
    VOCAB = 16        # input_size
    E = 32            # embedding_size
    H = 32            # hidden_size
    NUM_LAYERS = 1    # num_layers (dropout inactive for a single layer)
    B, T = 2, 8       # batch, sequence length

    key = jax.random.PRNGKey(0)
    k_emb, k_wih, k_whh, k_bih, k_bhh, k_x = jax.random.split(key, 6)

    # Deterministic parameter init (PyTorch-style distributions).
    emb_w = jax.random.normal(k_emb, (VOCAB, E), jnp.float32)            # N(0,1)
    bound = 1.0 / jnp.sqrt(jnp.float32(H))
    w_ih = jax.random.uniform(k_wih, (4 * H, E), jnp.float32, -bound, bound)
    w_hh = jax.random.uniform(k_whh, (4 * H, H), jnp.float32, -bound, bound)
    b_ih = jax.random.uniform(k_bih, (4 * H,), jnp.float32, -bound, bound)
    b_hh = jax.random.uniform(k_bhh, (4 * H,), jnp.float32, -bound, bound)

    # Input token ids: [B, T] integers in [0, VOCAB).
    x_tokens = jax.random.randint(k_x, (B, T), 0, VOCAB, dtype=jnp.int32)

    outputs, (h_n, c_n) = encoder_forward(x_tokens, emb_w, w_ih, w_hh, b_ih, b_hh)
    outputs = jax.block_until_ready(outputs)
    h_n = jax.block_until_ready(h_n)
    c_n = jax.block_until_ready(c_n)

    # Sanity check against pure-JAX f32 reference. Tolerance loosened because
    # the recurrent matmul uses bf16 MXU operands (expected precision loss).
    ref_out, (ref_h, ref_c) = _reference_forward(x_tokens, emb_w, w_ih, w_hh, b_ih, b_hh)
    assert outputs.shape == (B, T, H)
    assert h_n.shape == (NUM_LAYERS, B, H) and c_n.shape == (NUM_LAYERS, B, H)
    assert jnp.allclose(outputs, ref_out, atol=2e-2, rtol=2e-2)
    assert jnp.allclose(h_n, ref_h, atol=2e-2, rtol=2e-2)
    assert jnp.allclose(c_n, ref_c, atol=2e-2, rtol=2e-2)

    print("KERNEL_OK")
</pallas_src>

<mosaic_0001>
module attributes {stable_mosaic.version = 11 : i64} {
  func.func @kernel(%arg0: memref<64x1xi32, #tpu.memory_space<vmem>>, %arg1: memref<16x128xf32, #tpu.memory_space<vmem>>, %arg2: memref<32x128xbf16, #tpu.memory_space<vmem>>, %arg3: memref<2x288xf32, #tpu.memory_space<vmem>>) attributes {dimension_semantics = [], scalar_prefetch = 0 : i64, scratch_operands = 0 : i64, tpu.core_type = #tpu.core_type<tc>} {
    %c0 = arith.constant 0 : index
    %c0_0 = arith.constant 0 : index
    %0 = vector.load %arg0[%c0, %c0_0] : memref<64x1xi32, #tpu.memory_space<vmem>>, vector<64x1xi32>
    %1 = tpu.iota {dimensions = array<i32: 1>} : vector<64x16xi32>
    %2 = vector.broadcast %0 : vector<64x1xi32> to vector<64x16xi32>
    %3 = arith.cmpi eq, %1, %2 : vector<64x16xi32>
    %4 = arith.extui %3 : vector<64x16xi1> to vector<64x16xi32>
    %5 = arith.sitofp %4 : vector<64x16xi32> to vector<64x16xf32>
    %c0_1 = arith.constant 0 : index
    %c0_2 = arith.constant 0 : index
    %6 = vector.load %arg1[%c0_1, %c0_2] : memref<16x128xf32, #tpu.memory_space<vmem>>, vector<16x128xf32>
    %cst = arith.constant dense<0.000000e+00> : vector<64x128xf32>
    %7 = tpu.matmul %5, %6, %cst {dimension_numbers = #tpu.dot_dimension_numbers<[1], [0], [0], [1], [0, 0, 1, 1], [], []>} : vector<64x16xf32>, vector<16x128xf32>, vector<64x128xf32> -> vector<64x128xf32>
    %c0_3 = arith.constant 0 : index
    %c0_4 = arith.constant 0 : index
    %8 = vector.load %arg2[%c0_3, %c0_4] : memref<32x128xbf16, #tpu.memory_space<vmem>>, vector<32x128xbf16>
    %cst_5 = arith.constant 0.000000e+00 : f32
    %9 = vector.broadcast %cst_5 : f32 to vector<8x32xf32>
    %cst_6 = arith.constant 0.000000e+00 : f32
    %10 = vector.broadcast %cst_6 : f32 to vector<8x32xf32>
    %11 = vector.extract_strided_slice %7 {offsets = [0, 0], sizes = [8, 128], strides = [1, 1]} : vector<64x128xf32> to vector<8x128xf32>
    %12 = arith.truncf %9 : vector<8x32xf32> to vector<8x32xbf16>
    %cst_7 = arith.constant dense<0.000000e+00> : vector<8x128xf32>
    %13 = tpu.matmul %12, %8, %cst_7 {dimension_numbers = #tpu.dot_dimension_numbers<[1], [0], [0], [1], [0, 0, 1, 1], [], []>} : vector<8x32xbf16>, vector<32x128xbf16>, vector<8x128xf32> -> vector<8x128xf32>
    %14 = arith.addf %11, %13 : vector<8x128xf32>
    %15 = arith.negf %14 : vector<8x128xf32>
    %16 = math.exp %15 : vector<8x128xf32>
    %cst_8 = arith.constant 1.000000e+00 : f32
    %17 = vector.broadcast %cst_8 : f32 to vector<8x128xf32>
    %18 = arith.addf %17, %16 : vector<8x128xf32>
    %19 = arith.divf %17, %18 : vector<8x128xf32>
    %20 = math.tanh %14 : vector<8x128xf32>
    %21 = vector.extract_strided_slice %19 {offsets = [0, 0], sizes = [8, 32], strides = [1, 1]} : vector<8x128xf32> to vector<8x32xf32>
    %22 = vector.extract_strided_slice %19 {offsets = [0, 32], sizes = [8, 32], strides = [1, 1]} : vector<8x128xf32> to vector<8x32xf32>
    %23 = vector.extract_strided_slice %20 {offsets = [0, 64], sizes = [8, 32], strides = [1, 1]} : vector<8x128xf32> to vector<8x32xf32>
    %24 = vector.extract_strided_slice %19 {offsets = [0, 96], sizes = [8, 32], strides = [1, 1]} : vector<8x128xf32> to vector<8x32xf32>
    %25 = arith.mulf %22, %10 : vector<8x32xf32>
    %26 = arith.mulf %21, %23 : vector<8x32xf32>
    %27 = arith.addf %25, %26 : vector<8x32xf32>
    %28 = math.tanh %27 : vector<8x32xf32>
    %29 = arith.mulf %24, %28 : vector<8x32xf32>
    %30 = vector.extract_strided_slice %7 {offsets = [8, 0], sizes = [8, 128], strides = [1, 1]} : vector<64x128xf32> to vector<8x128xf32>
    %31 = arith.truncf %29 : vector<8x32xf32> to vector<8x32xbf16>
    %cst_9 = arith.constant dense<0.000000e+00> : vector<8x128xf32>
    %32 = tpu.matmul %31, %8, %cst_9 {dimension_numbers = #tpu.dot_dimension_numbers<[1], [0], [0], [1], [0, 0, 1, 1], [], []>} : vector<8x32xbf16>, vector<32x128xbf16>, vector<8x128xf32> -> vector<8x128xf32>
    %33 = arith.addf %30, %32 : vector<8x128xf32>
    %34 = arith.negf %33 : vector<8x128xf32>
    %35 = math.exp %34 : vector<8x128xf32>
    %cst_10 = arith.constant 1.000000e+00 : f32
    %36 = vector.broadcast %cst_10 : f32 to vector<8x128xf32>
    %37 = arith.addf %36, %35 : vector<8x128xf32>
    %38 = arith.divf %36, %37 : vector<8x128xf32>
    %39 = math.tanh %33 : vector<8x128xf32>
    %40 = vector.extract_strided_slice %38 {offsets = [0, 0], sizes = [8, 32], strides = [1, 1]} : vector<8x128xf32> to vector<8x32xf32>
    %41 = vector.extract_strided_slice %38 {offsets = [0, 32], sizes = [8, 32], strides = [1, 1]} : vector<8x128xf32> to vector<8x32xf32>
    %42 = vector.extract_strided_slice %39 {offsets = [0, 64], sizes = [8, 32], strides = [1, 1]} : vector<8x128xf32> to vector<8x32xf32>
    %43 = vector.extract_strided_slice %38 {offsets = [0, 96], sizes = [8, 32], strides = [1, 1]} : vector<8x128xf32> to vector<8x32xf32>
    %44 = arith.mulf %41, %27 : vector<8x32xf32>
    %45 = arith.mulf %40, %42 : vector<8x32xf32>
    %46 = arith.addf %44, %45 : vector<8x32xf32>
    %47 = math.tanh %46 : vector<8x32xf32>
    %48 = arith.mulf %43, %47 : vector<8x32xf32>
    %49 = vector.extract_strided_slice %7 {offsets = [16, 0], sizes = [8, 128], strides = [1, 1]} : vector<64x128xf32> to vector<8x128xf32>
    %50 = arith.truncf %48 : vector<8x32xf32> to vector<8x32xbf16>
    %cst_11 = arith.constant dense<0.000000e+00> : vector<8x128xf32>
    %51 = tpu.matmul %50, %8, %cst_11 {dimension_numbers = #tpu.dot_dimension_numbers<[1], [0], [0], [1], [0, 0, 1, 1], [], []>} : vector<8x32xbf16>, vector<32x128xbf16>, vector<8x128xf32> -> vector<8x128xf32>
    %52 = arith.addf %49, %51 : vector<8x128xf32>
    %53 = arith.negf %52 : vector<8x128xf32>
    %54 = math.exp %53 : vector<8x128xf32>
    %cst_12 = arith.constant 1.000000e+00 : f32
    %55 = vector.broadcast %cst_12 : f32 to vector<8x128xf32>
    %56 = arith.addf %55, %54 : vector<8x128xf32>
    %57 = arith.divf %55, %56 : vector<8x128xf32>
    %58 = math.tanh %52 : vector<8x128xf32>
    %59 = vector.extract_strided_slice %57 {offsets = [0, 0], sizes = [8, 32], strides = [1, 1]} : vector<8x128xf32> to vector<8x32xf32>
    %60 = vector.extract_strided_slice %57 {offsets = [0, 32], sizes = [8, 32], strides = [1, 1]} : vector<8x128xf32> to vector<8x32xf32>
    %61 = vector.extract_strided_slice %58 {offsets = [0, 64], sizes = [8, 32], strides = [1, 1]} : vector<8x128xf32> to vector<8x32xf32>
    %62 = vector.extract_strided_slice %57 {offsets = [0, 96], sizes = [8, 32], strides = [1, 1]} : vector<8x128xf32> to vector<8x32xf32>
    %63 = arith.mulf %60, %46 : vector<8x32xf32>
    %64 = arith.mulf %59, %61 : vector<8x32xf32>
    %65 = arith.addf %63, %64 : vector<8x32xf32>
    %66 = math.tanh %65 : vector<8x32xf32>
    %67 = arith.mulf %62, %66 : vector<8x32xf32>
    %68 = vector.extract_strided_slice %7 {offsets = [24, 0], sizes = [8, 128], strides = [1, 1]} : vector<64x128xf32> to vector<8x128xf32>
    %69 = arith.truncf %67 : vector<8x32xf32> to vector<8x32xbf16>
    %cst_13 = arith.constant dense<0.000000e+00> : vector<8x128xf32>
    %70 = tpu.matmul %69, %8, %cst_13 {dimension_numbers = #tpu.dot_dimension_numbers<[1], [0], [0], [1], [0, 0, 1, 1], [], []>} : vector<8x32xbf16>, vector<32x128xbf16>, vector<8x128xf32> -> vector<8x128xf32>
    %71 = arith.addf %68, %70 : vector<8x128xf32>
    %72 = arith.negf %71 : vector<8x128xf32>
    %73 = math.exp %72 : vector<8x128xf32>
    %cst_14 = arith.constant 1.000000e+00 : f32
    %74 = vector.broadcast %cst_14 : f32 to vector<8x128xf32>
    %75 = arith.addf %74, %73 : vector<8x128xf32>
    %76 = arith.divf %74, %75 : vector<8x128xf32>
    %77 = math.tanh %71 : vector<8x128xf32>
    %78 = vector.extract_strided_slice %76 {offsets = [0, 0], sizes = [8, 32], strides = [1, 1]} : vector<8x128xf32> to vector<8x32xf32>
    %79 = vector.extract_strided_slice %76 {offsets = [0, 32], sizes = [8, 32], strides = [1, 1]} : vector<8x128xf32> to vector<8x32xf32>
    %80 = vector.extract_strided_slice %77 {offsets = [0, 64], sizes = [8, 32], strides = [1, 1]} : vector<8x128xf32> to vector<8x32xf32>
    %81 = vector.extract_strided_slice %76 {offsets = [0, 96], sizes = [8, 32], strides = [1, 1]} : vector<8x128xf32> to vector<8x32xf32>
    %82 = arith.mulf %79, %65 : vector<8x32xf32>
    %83 = arith.mulf %78, %80 : vector<8x32xf32>
    %84 = arith.addf %82, %83 : vector<8x32xf32>
    %85 = math.tanh %84 : vector<8x32xf32>
    %86 = arith.mulf %81, %85 : vector<8x32xf32>
    %87 = vector.extract_strided_slice %7 {offsets = [32, 0], sizes = [8, 128], strides = [1, 1]} : vector<64x128xf32> to vector<8x128xf32>
    %88 = arith.truncf %86 : vector<8x32xf32> to vector<8x32xbf16>
    %cst_15 = arith.constant dense<0.000000e+00> : vector<8x128xf32>
    %89 = tpu.matmul %88, %8, %cst_15 {dimension_numbers = #tpu.dot_dimension_numbers<[1], [0], [0], [1], [0, 0, 1, 1], [], []>} : vector<8x32xbf16>, vector<32x128xbf16>, vector<8x128xf32> -> vector<8x128xf32>
    %90 = arith.addf %87, %89 : vector<8x128xf32>
    %91 = arith.negf %90 : vector<8x128xf32>
    %92 = math.exp %91 : vector<8x128xf32>
    %cst_16 = arith.constant 1.000000e+00 : f32
    %93 = vector.broadcast %cst_16 : f32 to vector<8x128xf32>
    %94 = arith.addf %93, %92 : vector<8x128xf32>
    %95 = arith.divf %93, %94 : vector<8x128xf32>
    %96 = math.tanh %90 : vector<8x128xf32>
    %97 = vector.extract_strided_slice %95 {offsets = [0, 0], sizes = [8, 32], strides = [1, 1]} : vector<8x128xf32> to vector<8x32xf32>
    %98 = vector.extract_strided_slice %95 {offsets = [0, 32], sizes = [8, 32], strides = [1, 1]} : vector<8x128xf32> to vector<8x32xf32>
    %99 = vector.extract_strided_slice %96 {offsets = [0, 64], sizes = [8, 32], strides = [1, 1]} : vector<8x128xf32> to vector<8x32xf32>
    %100 = vector.extract_strided_slice %95 {offsets = [0, 96], sizes = [8, 32], strides = [1, 1]} : vector<8x128xf32> to vector<8x32xf32>
    %101 = arith.mulf %98, %84 : vector<8x32xf32>
    %102 = arith.mulf %97, %99 : vector<8x32xf32>
    %103 = arith.addf %101, %102 : vector<8x32xf32>
    %104 = math.tanh %103 : vector<8x32xf32>
    %105 = arith.mulf %100, %104 : vector<8x32xf32>
    %106 = vector.extract_strided_slice %7 {offsets = [40, 0], sizes = [8, 128], strides = [1, 1]} : vector<64x128xf32> to vector<8x128xf32>
    %107 = arith.truncf %105 : vector<8x32xf32> to vector<8x32xbf16>
    %cst_17 = arith.constant dense<0.000000e+00> : vector<8x128xf32>
    %108 = tpu.matmul %107, %8, %cst_17 {dimension_numbers = #tpu.dot_dimension_numbers<[1], [0], [0], [1], [0, 0, 1, 1], [], []>} : vector<8x32xbf16>, vector<32x128xbf16>, vector<8x128xf32> -> vector<8x128xf32>
    %109 = arith.addf %106, %108 : vector<8x128xf32>
    %110 = arith.negf %109 : vector<8x128xf32>
    %111 = math.exp %110 : vector<8x128xf32>
    %cst_18 = arith.constant 1.000000e+00 : f32
    %112 = vector.broadcast %cst_18 : f32 to vector<8x128xf32>
    %113 = arith.addf %112, %111 : vector<8x128xf32>
    %114 = arith.divf %112, %113 : vector<8x128xf32>
    %115 = math.tanh %109 : vector<8x128xf32>
    %116 = vector.extract_strided_slice %114 {offsets = [0, 0], sizes = [8, 32], strides = [1, 1]} : vector<8x128xf32> to vector<8x32xf32>
    %117 = vector.extract_strided_slice %114 {offsets = [0, 32], sizes = [8, 32], strides = [1, 1]} : vector<8x128xf32> to vector<8x32xf32>
    %118 = vector.extract_strided_slice %115 {offsets = [0, 64], sizes = [8, 32], strides = [1, 1]} : vector<8x128xf32> to vector<8x32xf32>
    %119 = vector.extract_strided_slice %114 {offsets = [0, 96], sizes = [8, 32], strides = [1, 1]} : vector<8x128xf32> to vector<8x32xf32>
    %120 = arith.mulf %117, %103 : vector<8x32xf32>
    %121 = arith.mulf %116, %118 : vector<8x32xf32>
    %122 = arith.addf %120, %121 : vector<8x32xf32>
    %123 = math.tanh %122 : vector<8x32xf32>
    %124 = arith.mulf %119, %123 : vector<8x32xf32>
    %125 = vector.extract_strided_slice %7 {offsets = [48, 0], sizes = [8, 128], strides = [1, 1]} : vector<64x128xf32> to vector<8x128xf32>
    %126 = arith.truncf %124 : vector<8x32xf32> to vector<8x32xbf16>
    %cst_19 = arith.constant dense<0.000000e+00> : vector<8x128xf32>
    %127 = tpu.matmul %126, %8, %cst_19 {dimension_numbers = #tpu.dot_dimension_numbers<[1], [0], [0], [1], [0, 0, 1, 1], [], []>} : vector<8x32xbf16>, vector<32x128xbf16>, vector<8x128xf32> -> vector<8x128xf32>
    %128 = arith.addf %125, %127 : vector<8x128xf32>
    %129 = arith.negf %128 : vector<8x128xf32>
    %130 = math.exp %129 : vector<8x128xf32>
    %cst_20 = arith.constant 1.000000e+00 : f32
    %131 = vector.broadcast %cst_20 : f32 to vector<8x128xf32>
    %132 = arith.addf %131, %130 : vector<8x128xf32>
    %133 = arith.divf %131, %132 : vector<8x128xf32>
    %134 = math.tanh %128 : vector<8x128xf32>
    %135 = vector.extract_strided_slice %133 {offsets = [0, 0], sizes = [8, 32], strides = [1, 1]} : vector<8x128xf32> to vector<8x32xf32>
    %136 = vector.extract_strided_slice %133 {offsets = [0, 32], sizes = [8, 32], strides = [1, 1]} : vector<8x128xf32> to vector<8x32xf32>
    %137 = vector.extract_strided_slice %134 {offsets = [0, 64], sizes = [8, 32], strides = [1, 1]} : vector<8x128xf32> to vector<8x32xf32>
    %138 = vector.extract_strided_slice %133 {offsets = [0, 96], sizes = [8, 32], strides = [1, 1]} : vector<8x128xf32> to vector<8x32xf32>
    %139 = arith.mulf %136, %122 : vector<8x32xf32>
    %140 = arith.mulf %135, %137 : vector<8x32xf32>
    %141 = arith.addf %139, %140 : vector<8x32xf32>
    %142 = math.tanh %141 : vector<8x32xf32>
    %143 = arith.mulf %138, %142 : vector<8x32xf32>
    %144 = vector.extract_strided_slice %7 {offsets = [56, 0], sizes = [8, 128], strides = [1, 1]} : vector<64x128xf32> to vector<8x128xf32>
    %145 = arith.truncf %143 : vector<8x32xf32> to vector<8x32xbf16>
    %cst_21 = arith.constant dense<0.000000e+00> : vector<8x128xf32>
    %146 = tpu.matmul %145, %8, %cst_21 {dimension_numbers = #tpu.dot_dimension_numbers<[1], [0], [0], [1], [0, 0, 1, 1], [], []>} : vector<8x32xbf16>, vector<32x128xbf16>, vector<8x128xf32> -> vector<8x128xf32>
    %147 = arith.addf %144, %146 : vector<8x128xf32>
    %148 = arith.negf %147 : vector<8x128xf32>
    %149 = math.exp %148 : vector<8x128xf32>
    %cst_22 = arith.constant 1.000000e+00 : f32
    %150 = vector.broadcast %cst_22 : f32 to vector<8x128xf32>
    %151 = arith.addf %150, %149 : vector<8x128xf32>
    %152 = arith.divf %150, %151 : vector<8x128xf32>
    %153 = math.tanh %147 : vector<8x128xf32>
    %154 = vector.extract_strided_slice %152 {offsets = [0, 0], sizes = [8, 32], strides = [1, 1]} : vector<8x128xf32> to vector<8x32xf32>
    %155 = vector.extract_strided_slice %152 {offsets = [0, 32], sizes = [8, 32], strides = [1, 1]} : vector<8x128xf32> to vector<8x32xf32>
    %156 = vector.extract_strided_slice %153 {offsets = [0, 64], sizes = [8, 32], strides = [1, 1]} : vector<8x128xf32> to vector<8x32xf32>
    %157 = vector.extract_strided_slice %152 {offsets = [0, 96], sizes = [8, 32], strides = [1, 1]} : vector<8x128xf32> to vector<8x32xf32>
    %158 = arith.mulf %155, %141 : vector<8x32xf32>
    %159 = arith.mulf %154, %156 : vector<8x32xf32>
    %160 = arith.addf %158, %159 : vector<8x32xf32>
    %161 = math.tanh %160 : vector<8x32xf32>
    %162 = arith.mulf %157, %161 : vector<8x32xf32>
    %163 = tpu.concatenate %29, %48, %67, %86, %105, %124, %143, %162, %160 in 1 : vector<8x32xf32>, vector<8x32xf32>, vector<8x32xf32>, vector<8x32xf32>, vector<8x32xf32>, vector<8x32xf32>, vector<8x32xf32>, vector<8x32xf32>, vector<8x32xf32> -> vector<8x288xf32>
    %164 = vector.extract_strided_slice %163 {offsets = [0, 0], sizes = [2, 288], strides = [1, 1]} : vector<8x288xf32> to vector<2x288xf32>
    %c0_23 = arith.constant 0 : index
    %c0_24 = arith.constant 0 : index
    %165 = vector.load %arg3[%c0_23, %c0_24] : memref<2x288xf32, #tpu.memory_space<vmem>>, vector<2x288xf32>
    tpu.vector_store %arg3[%c0_23, %c0_24], %164 {strides = array<i32>} : memref<2x288xf32, #tpu.memory_space<vmem>>, vector<2x288xf32>,
    return
  }
}

</mosaic_0001>

<bundles_post_ra>
// kernel: encoder_forward.1
= control target key start
LH: loop header
LB: loop body
LE: loop exit
PB: predicated region body
PF: predicated region fallthrough
CT: control target
= control target key end

     0   :  { %v1084_v0 = vmov 0   ;;  %v1085_v2 = vmov 0.0   ;;  %vm1086_vm0 = vmmov 0   ;;  %v23_v9 = vlaneseq  ;;  %s1315_s0 = inlined_call_operand.vmem [shape: s32[64,1], index: 0, kind: input, shape index: {}]   ;;  %s1316_s2 = inlined_call_operand.vmem [shape: bf16[32,128], index: 2, kind: input, shape index: {}]   ;;  %s1317_s1 = inlined_call_operand.vmem [shape: f32[16,128], index: 1, kind: input, shape index: {}]   ;;  %s1318_s3 = inlined_call_operand.vmem [shape: f32[2,288], index: 3, kind: output, shape index: {}]  }
   0x1   :  { %1016 = vset.pattern.permute.xlu0 %v1084_v0  ;;  %v15_v1 = vld [vmem:[%s1315_s0] sm:$0xff]  ;;  %941 = vmatprep.subr.bf16.mxu1 %v1085_v2  ;;  %v16_v4 = vld [vmem:[%s1315_s0 + $0x8] sm:$0xff]  ;;  %vm75_vm1 = vcmask 130048   ;;  %vm221_vm4 = vcmask 261120   ;;  %v17_v49 = vld [vmem:[%s1315_s0 + $0x10] sm:$0xff]  ;;  %vm822_vm11 = vcmask 523264  }
   0x2   :  { %26 = vperm.xlu0 %1016, %v15_v1   ;;  %v1118_v3 = vld [vmem:[%s1316_s2] sm:$0xff]   ;;  %1017 = vset.pattern.permute.xlu1 %v1084_v0  ;;  %v1130_v6 = vld [vmem:[%s1316_s2 + $0x8] sm:$0xff]   ;;  %v1148_v10 = vand.u32 127, %v23_v9  ;;  %s1088_s2 = smov 32   ;;  %v21_v51 = vld [vmem:[%s1315_s0 + $0x30] sm:$0xff]  ;;  %vm824_vm12 = vcmask 785408  }
   0x3   :  { %v73_v5 = vld [vmem:[%s1317_s1] sm:$0xff]  ;;  %942 = vmatpush3.bf16.msra.mxu1 %v1118_v3  ;;  %v74_v7 = vld [vmem:[%s1317_s1 + $0x8] sm:$0xff]  ;;  %945 = vmatprep.mubr.msk.bf16.mxu1 %vm1086_vm0, %v1085_v2  ;;  %s1087_s1 = smov 64   ;;  %v18_v56 = vld [vmem:[%s1315_s0 + $0x18] sm:$0xff]  ;;  %vm848_vm13 = vcmask 1041408   ;;  %vm849_vm14 = vcmask 1043458  }
   0x4   :  { %943 = vmatprep.subr.bf16.mxu1 %v1085_v2  ;;  %v1005_v8 = vpack.c.bf16 %v74_v7, %v73_v5  ;;  %v19_v50 = vld [vmem:[%s1315_s0 + $0x20] sm:$0xff]  ;;  %v20_v58 = vld [vmem:[%s1315_s0 + $0x28] sm:$0xff]  ;;  %v22_v60 = vld [vmem:[%s1315_s0 + $0x38] sm:$0xff]  ;;  %s1089_s0 = smov 96  }
   0x5   :  { %vm850_vm15 = vmor %vm849_vm14, %vm848_vm13 }
   0x6   :  { %29 = vperm.xlu0 %1016, %v16_v4   ;;  %1006 = vmatprep.subr.bf16.mxu0 %v1005_v8 }
   0x7   :  { %944 = vmatpush3.bf16.msra.mxu1 %v1130_v6  ;;  %1008 = vmatpush3.bf16.msra.mxu0 %v1005_v8 }
   0x8   :  { %949 = vmatprep.subr.bf16.mxu1 %v1085_v2  ;;  %957 = vmatprep.subr.bf16.mxu0 %v1085_v2 }
   0xa   :  { %946 = vmatmul.mubr.bf16.vlgmr.msra.gmra.mrb[0].mxu1 %v1084_v0 }
   0xb   :  { %950 = vmatpush3.bf16.msra.mxu1 %v1118_v3  ;;  %953 = vmatprep.mubr.msk.bf16.mxu1 %vm1086_vm0, %v1085_v2 }
   0xc   :  { %951 = vmatprep.subr.bf16.mxu1 %v1085_v2 }
   0xf   :  { %952 = vmatpush3.bf16.msra.mxu1 %v1130_v6 }
  0x10   :  { %965 = vmatprep.subr.bf16.mxu1 %v1085_v2 }
  0x81   :  { %v27_v11 = vpop.permute.xlu0 %26 }
  0x82   :  { %vm49_vm2 = vcmp.eq.s32.totalorder %v1148_v10, %v27_v11 }
  0x83   :  { %v858_v12 = vsel %vm49_vm2, 1.0, %v1085_v2 }
  0x84   :  { %929 = vmatprep.mubr.msk.f32.mxu0 %vm75_vm1, %v858_v12 }
  0x85   :  { %v30_v13 = vpop.permute.xlu0 %29 }
  0x86   :  { %vm50_vm3 = vcmp.eq.s32.totalorder %v1148_v10, %v30_v13 }
  0x87   :  { %v859_v14 = vsel %vm50_vm3, 1.0, %v1085_v2 }
  0x88   :  { %930 = vmatmul.mubr.msk.f32.vlgmr.msra.gmra.mrb[0].mxu0 %vm75_vm1, %v859_v14 }
  0x89   :  { %958 = vmatpush3.bf16.msra.mxu0 %v1118_v3 }
  0x8a   :  { %959 = vmatprep.subr.bf16.mxu0 %v1085_v2 }
  0x8d   :  { %960 = vmatpush3.bf16.msra.mxu0 %v1130_v6 }
  0x8e   :  { %973 = vmatprep.subr.bf16.mxu0 %v1085_v2 }
  0xdd   :  { %v259_v15 = vpop.f32.mrb[0].mxu1 }
  0xde   :  { %v947_v16 = vpop.f32.mrb[1].mxu1 }
  0xdf   :  { %v262_v17 = vpop.f32.mrb[2].mxu1 }
  0xe0   :  { %v948_v18 = vpop.f32.mrb[3].mxu1 }
 0x15b   :  { %v931_v19 = vpop.f32.mrb[0].mxu0 }
 0x15c   :  { %v166_v20 = vpop.f32.mrb[1].mxu0 }
 0x15d   :  { %v265_v21 = vadd.f32 %v259_v15, %v166_v20 }
 0x15f   :  { %1020 = vtanh.f32 %v265_v21  ;;  %v876_v23 = vmul.f32 -1.442695, %v265_v21 }
 0x161   :  { %1022 = vpow2.f32 %v876_v23 }
 0x169   :  { %v1021_v22 = vpop.eup %1020 }
 0x16a   :  { %275 = vrot.lane.b32.xlu1 %v1021_v22, %s1087_s1 }
 0x16b   :  { %v1023_v24 = vpop.eup %1022 }
 0x16c   :  { %v269_v25 = vadd.f32 1.0, %v1023_v24 }
 0x16e   :  { %1024 = vrcp.f32 %v269_v25 }
 0x178   :  { %v1025_v26 = vpop.eup %1024 }
 0x179   :  { %v273_v29 = vmul.f32 0.0, %v1025_v26 }
 0x1dc   :  { %v276_v27 = vpop.permute.xlu1 %275 }
 0x1dd   :  { %v278_v28 = vmul.f32 %v1025_v26, %v276_v27 }
 0x1df   :  { %280 = vrot.lane.b32.xlu1 %v278_v28, %s1088_s2 }
 0x251   :  { %v281_v30 = vpop.permute.xlu1 %280 }
 0x252   :  { %v283_v31 = vadd.f32 %v281_v30, %v273_v29 }
 0x254   :  { %1026 = vtanh.f32 %v283_v31 }
 0x25e   :  { %v1027_v32 = vpop.eup %1026 }
 0x25f   :  { %286 = vrot.lane.b32.xlu0 %v1027_v32, %s1087_s1 }
 0x2d1   :  { %v287_v33 = vpop.permute.xlu0 %286 }
 0x2d2   :  { %v1163_v34 = vmul.f32 %v1025_v26, %v287_v33 }
 0x2d4   :  { %v290_v35 = vpack.c.bf16 %v1163_v34, %v1163_v34 }
 0x2d6   :  { %292 = vrot.lane.b32.xlu1 %v290_v35, %s1088_s2 }
 0x348   :  { %v293_v36 = vpop.permute.xlu1 %292 }
 0x349   :  { %954 = vmatmul.mubr.msk.bf16.vlgmr.msra.gmra.mrb[4].mxu1 %vm221_vm4, %v293_v36 }
 0x34a   :  { %966 = vmatpush3.bf16.msra.mxu1 %v1118_v3  ;;  %969 = vmatprep.mubr.msk.bf16.mxu1 %vm1086_vm0, %v1085_v2 }
 0x34b   :  { %967 = vmatprep.subr.bf16.mxu1 %v1085_v2 }
 0x34e   :  { %968 = vmatpush3.bf16.msra.mxu1 %v1130_v6 }
 0x34f   :  { %981 = vmatprep.subr.bf16.mxu1 %v1085_v2 }
 0x41c   :  { %v331_v37 = vpop.f32.mrb[4].mxu1 }
 0x41d   :  { %v337_v38 = vadd.f32 %v931_v19, %v331_v37  ;;  %v955_v39 = vpop.f32.mrb[5].mxu1 }
 0x41e   :  { %v334_v40 = vpop.f32.mrb[6].mxu1 }
 0x41f   :  { %1028 = vtanh.f32 %v337_v38  ;;  %v956_v41 = vpop.f32.mrb[7].mxu1  ;;  %v878_v43 = vmul.f32 -1.442695, %v337_v38 }
 0x421   :  { %1030 = vpow2.f32 %v878_v43 }
 0x429   :  { %v1029_v42 = vpop.eup %1028 }
 0x42a   :  { %347 = vrot.lane.b32.xlu0 %v1029_v42, %s1087_s1 }
 0x42b   :  { %v1031_v44 = vpop.eup %1030 }
 0x42c   :  { %v341_v45 = vadd.f32 1.0, %v1031_v44 }
 0x42e   :  { %1032 = vrcp.f32 %v341_v45 }
 0x438   :  { %v1033_v46 = vpop.eup %1032 }
 0x439   :  { %v345_v52 = vmul.f32 %v1033_v46, %v283_v31 }
 0x49c   :  { %v348_v47 = vpop.permute.xlu0 %347 }
 0x49d   :  { %v350_v48 = vmul.f32 %v1033_v46, %v348_v47 }
 0x49f   :  { %352 = vrot.lane.b32.xlu1 %v350_v48, %s1088_s2 }
 0x4a3   :  { %32 = vperm.xlu1 %1017, %v17_v49  }
 0x4a7   :  { %38 = vperm.xlu1 %1017, %v19_v50  }
 0x4ab   :  { %44 = vperm.xlu1 %1017, %v21_v51  }
 0x511   :  { %v353_v53 = vpop.permute.xlu1 %352 }
 0x512   :  { %v1186_v54 = vadd.f32 %v353_v53, %v345_v52 }
 0x514   :  { %1034 = vtanh.f32 %v1186_v54 }
 0x51e   :  { %v1035_v55 = vpop.eup %1034 }
 0x51f   :  { %358 = vrot.lane.b32.xlu0 %v1035_v55, %s1087_s1 }
 0x522   :  { %v33_v57 = vpop.permute.xlu1 %32 }
 0x523   :  { %35 = vperm.xlu0 %1016, %v18_v56   ;;  %vm51_vm5 = vcmp.eq.s32.totalorder %v1148_v10, %v33_v57 }
 0x524   :  { %v860_v59 = vsel %vm51_vm5, 1.0, %v1085_v2 }
 0x525   :  { %932 = vmatprep.mubr.msk.f32.mxu0 %vm75_vm1, %v860_v59 }
 0x526   :  { %v39_v0 = vpop.permute.xlu1 %38 }
 0x527   :  { %41 = vperm.xlu0 %1016, %v20_v58   ;;  %vm53_vm6 = vcmp.eq.s32.totalorder %v1148_v10, %v39_v0 }
 0x528   :  { %v862_v5 = vsel %vm53_vm6, 1.0, %v1085_v2 }
 0x52a   :  { %v45_v1 = vpop.permute.xlu1 %44 }
 0x52b   :  { %47 = vperm.xlu0 %1016, %v22_v60   ;;  %vm55_vm8 = vcmp.eq.s32.totalorder %v1148_v10, %v45_v1 }
 0x52c   :  { %v864_v11 = vsel %vm55_vm8, 1.0, %v1085_v2 }
 0x591   :  { %v359_v61 = vpop.permute.xlu0 %358 }
 0x592   :  { %v1202_v62 = vmul.f32 %v1033_v46, %v359_v61 }
 0x594   :  { %v362_v63 = vpack.c.bf16 %v1202_v62, %v1202_v62 }
 0x596   :  { %364 = vrot.lane.b32.xlu1 %v362_v63, %s1088_s2 }
 0x5a2   :  { %v36_v4 = vpop.permute.xlu0 %35 }
 0x5a3   :  { %vm52_vm7 = vcmp.eq.s32.totalorder %v1148_v10, %v36_v4 }
 0x5a4   :  { %v861_v7 = vsel %vm52_vm7, 1.0, %v1085_v2 }
 0x5a5   :  { %933 = vmatmul.mubr.msk.f32.gmra.mrb[2].mxu0 %vm75_vm1, %v861_v7 }
 0x5a6   :  { %v42_v8 = vpop.permute.xlu0 %41  ;;  %935 = vmatprep.mubr.msk.f32.mxu0 %vm75_vm1, %v862_v5 }
 0x5a7   :  { %vm54_vm9 = vcmp.eq.s32.totalorder %v1148_v10, %v42_v8 }
 0x5a8   :  { %v863_v12 = vsel %vm54_vm9, 1.0, %v1085_v2 }
 0x5a9   :  { %936 = vmatmul.mubr.msk.f32.gmra.mrb[4].mxu0 %vm75_vm1, %v863_v12 }
 0x5aa   :  { %v48_v13 = vpop.permute.xlu0 %47  ;;  %938 = vmatprep.mubr.msk.f32.mxu0 %vm75_vm1, %v864_v11 }
 0x5ab   :  { %vm56_vm10 = vcmp.eq.s32.totalorder %v1148_v10, %v48_v13 }
 0x5ac   :  { %v865_v14 = vsel %vm56_vm10, 1.0, %v1085_v2 }
 0x5ad   :  { %939 = vmatmul.mubr.msk.f32.gmra.mrb[6].mxu0 %vm75_vm1, %v865_v14 }
 0x5ae   :  { %961 = vmatprep.mubr.msk.bf16.mxu0 %vm1086_vm0, %v1085_v2 }
 0x608   :  { %v365_v15 = vpop.permute.xlu1 %364 }
 0x609   :  { %962 = vmatmul.mubr.msk.bf16.vlgmr.msra.gmra.mrb[8].mxu0 %vm221_vm4, %v365_v15 }
 0x60a   :  { %974 = vmatpush3.bf16.msra.mxu0 %v1118_v3  ;;  %977 = vmatprep.mubr.msk.bf16.mxu0 %vm1086_vm0, %v1085_v2 }
 0x60b   :  { %975 = vmatprep.subr.bf16.mxu0 %v1085_v2 }
 0x60e   :  { %976 = vmatpush3.bf16.msra.mxu0 %v1130_v6 }
 0x60f   :  { %989 = vmatprep.subr.bf16.mxu0 %v1085_v2 }
 0x678   :  { %v934_v10 = vpop.f32.mrb[2].mxu0 }
 0x679   :  { %v176_v16 = vpop.f32.mrb[3].mxu0 }
 0x67c   :  { %v1231_v17 = vpop.f32.mrb[4].mxu0 }
 0x67d   :  { %v1233_v18 = vpop.f32.mrb[5].mxu0 }
 0x680   :  { %v1235_v19 = vpop.f32.mrb[6].mxu0 }
 0x681   :  { %v1237_v20 = vpop.f32.mrb[7].mxu0 }
 0x6dc   :  { %v403_v21 = vpop.f32.mrb[8].mxu0 }
 0x6dd   :  { %v409_v22 = vadd.f32 %v403_v21, %v176_v16  ;;  %v963_v23 = vpop.f32.mrb[9].mxu0 }
 0x6de   :  { %v406_v24 = vpop.f32.mrb[10].mxu0 }
 0x6df   :  { %1036 = vtanh.f32 %v409_v22  ;;  %v964_v25 = vpop.f32.mrb[11].mxu0  ;;  %v880_v27 = vmul.f32 -1.442695, %v409_v22 }
 0x6e1   :  { %1038 = vpow2.f32 %v880_v27 }
 0x6e9   :  { %v1037_v26 = vpop.eup %1036 }
 0x6ea   :  { %419 = vrot.lane.b32.xlu0 %v1037_v26, %s1087_s1 }
 0x6eb   :  { %v1039_v28 = vpop.eup %1038 }
 0x6ec   :  { %v413_v29 = vadd.f32 1.0, %v1039_v28 }
 0x6ee   :  { %1040 = vrcp.f32 %v413_v29 }
 0x6f8   :  { %v1041_v30 = vpop.eup %1040 }
 0x6f9   :  { %v417_v33 = vmul.f32 %v1041_v30, %v1186_v54 }
 0x75c   :  { %v420_v31 = vpop.permute.xlu0 %419 }
 0x75d   :  { %v422_v32 = vmul.f32 %v1041_v30, %v420_v31 }
 0x75f   :  { %424 = vrot.lane.b32.xlu1 %v422_v32, %s1088_s2 }
 0x7d1   :  { %v425_v35 = vpop.permute.xlu1 %424 }
 0x7d2   :  { %v427_v36 = vadd.f32 %v425_v35, %v417_v33 }
 0x7d4   :  { %1042 = vtanh.f32 %v427_v36 }
 0x7de   :  { %v1043_v37 = vpop.eup %1042 }
 0x7df   :  { %430 = vrot.lane.b32.xlu0 %v1043_v37, %s1087_s1 }
 0x851   :  { %v431_v38 = vpop.permute.xlu0 %430 }
 0x852   :  { %v1243_v39 = vmul.f32 %v1041_v30, %v431_v38 }
 0x854   :  { %v434_v40 = vpack.c.bf16 %v1243_v39, %v1243_v39 }
 0x856   :  { %436 = vrot.lane.b32.xlu1 %v434_v40, %s1088_s2 }
 0x8c8   :  { %v437_v41 = vpop.permute.xlu1 %436 }
 0x8c9   :  { %970 = vmatmul.mubr.msk.bf16.vlgmr.msra.gmra.mrb[8].mxu1 %vm221_vm4, %v437_v41 }
 0x8ca   :  { %982 = vmatpush3.bf16.msra.mxu1 %v1118_v3  ;;  %985 = vmatprep.mubr.msk.bf16.mxu1 %vm1086_vm0, %v1085_v2 }
 0x8cb   :  { %983 = vmatprep.subr.bf16.mxu1 %v1085_v2 }
 0x8ce   :  { %984 = vmatpush3.bf16.msra.mxu1 %v1130_v6 }
 0x8cf   :  { %997 = vmatprep.subr.bf16.mxu1 %v1085_v2 }
 0x99c   :  { %v475_v42 = vpop.f32.mrb[8].mxu1 }
 0x99d   :  { %v481_v43 = vadd.f32 %v934_v10, %v475_v42  ;;  %v971_v44 = vpop.f32.mrb[9].mxu1 }
 0x99e   :  { %v478_v45 = vpop.f32.mrb[10].mxu1 }
 0x99f   :  { %1044 = vtanh.f32 %v481_v43  ;;  %v972_v46 = vpop.f32.mrb[11].mxu1  ;;  %v882_v48 = vmul.f32 -1.442695, %v481_v43 }
 0x9a1   :  { %1046 = vpow2.f32 %v882_v48 }
 0x9a9   :  { %v1045_v47 = vpop.eup %1044 }
 0x9aa   :  { %491 = vrot.lane.b32.xlu0 %v1045_v47, %s1087_s1 }
 0x9ab   :  { %v1047_v49 = vpop.eup %1046 }
 0x9ac   :  { %v485_v50 = vadd.f32 1.0, %v1047_v49 }
 0x9ae   :  { %1048 = vrcp.f32 %v485_v50 }
 0x9b8   :  { %v1049_v51 = vpop.eup %1048 }
 0x9b9   :  { %v489_v54 = vmul.f32 %v1049_v51, %v427_v36 }
 0xa1c   :  { %v492_v52 = vpop.permute.xlu0 %491 }
 0xa1d   :  { %v494_v53 = vmul.f32 %v1049_v51, %v492_v52 }
 0xa1f   :  { %496 = vrot.lane.b32.xlu1 %v494_v53, %s1088_s2 }
 0xa91   :  { %v497_v55 = vpop.permute.xlu1 %496 }
 0xa92   :  { %v499_v56 = vadd.f32 %v497_v55, %v489_v54 }
 0xa94   :  { %1050 = vtanh.f32 %v499_v56 }
 0xa9e   :  { %v1051_v57 = vpop.eup %1050 }
 0xa9f   :  { %502 = vrot.lane.b32.xlu0 %v1051_v57, %s1087_s1 }
 0xb11   :  { %v503_v58 = vpop.permute.xlu0 %502 }
 0xb12   :  { %v1258_v59 = vmul.f32 %v1049_v51, %v503_v58 }
 0xb14   :  { %v506_v60 = vpack.c.bf16 %v1258_v59, %v1258_v59 }
 0xb16   :  { %508 = vrot.lane.b32.xlu1 %v506_v60, %s1088_s2 }
 0xb88   :  { %v509_v61 = vpop.permute.xlu1 %508 }
 0xb89   :  { %978 = vmatmul.mubr.msk.bf16.vlgmr.msra.gmra.mrb[12].mxu0 %vm221_vm4, %v509_v61 }
 0xb8a   :  { %990 = vmatpush3.bf16.msra.mxu0 %v1118_v3  ;;  %993 = vmatprep.mubr.msk.bf16.mxu0 %vm1086_vm0, %v1085_v2 }
 0xb8b   :  { %991 = vmatprep.subr.bf16.mxu0 %v1085_v2 }
 0xb8e   :  { %992 = vmatpush3.bf16.msra.mxu0 %v1130_v6 }
 0xc5c   :  { %v547_v63 = vpop.f32.mrb[12].mxu0 }
 0xc5d   :  { %v553_v0 = vadd.f32 %v547_v63, %v1233_v18  ;;  %v979_v1 = vpop.f32.mrb[13].mxu0 }
 0xc5e   :  { %v550_v4 = vpop.f32.mrb[14].mxu0 }
 0xc5f   :  { %1052 = vtanh.f32 %v553_v0  ;;  %v980_v5 = vpop.f32.mrb[15].mxu0  ;;  %v884_v8 = vmul.f32 -1.442695, %v553_v0 }
 0xc61   :  { %1054 = vpow2.f32 %v884_v8 }
 0xc69   :  { %v1053_v7 = vpop.eup %1052 }
 0xc6a   :  { %563 = vrot.lane.b32.xlu0 %v1053_v7, %s1087_s1 }
 0xc6b   :  { %v1055_v11 = vpop.eup %1054 }
 0xc6c   :  { %v557_v12 = vadd.f32 1.0, %v1055_v11 }
 0xc6e   :  { %1056 = vrcp.f32 %v557_v12 }
 0xc78   :  { %v1057_v13 = vpop.eup %1056 }
 0xc79   :  { %v561_v10 = vmul.f32 %v1057_v13, %v499_v56 }
 0xcdc   :  { %v564_v14 = vpop.permute.xlu0 %563 }
 0xcdd   :  { %v566_v15 = vmul.f32 %v1057_v13, %v564_v14 }
 0xcdf   :  { %568 = vrot.lane.b32.xlu1 %v566_v15, %s1088_s2 }
 0xd51   :  { %v569_v16 = vpop.permute.xlu1 %568 }
 0xd52   :  { %v571_v18 = vadd.f32 %v569_v16, %v561_v10 }
 0xd54   :  { %1058 = vtanh.f32 %v571_v18 }
 0xd5e   :  { %v1059_v21 = vpop.eup %1058 }
 0xd5f   :  { %574 = vrot.lane.b32.xlu0 %v1059_v21, %s1087_s1 }
 0xdd1   :  { %v575_v22 = vpop.permute.xlu0 %574 }
 0xdd2   :  { %v1273_v23 = vmul.f32 %v1057_v13, %v575_v22 }
 0xdd4   :  { %v578_v24 = vpack.c.bf16 %v1273_v23, %v1273_v23 }
 0xdd6   :  { %580 = vrot.lane.b32.xlu1 %v578_v24, %s1088_s2 }
 0xe48   :  { %v581_v25 = vpop.permute.xlu1 %580 }
 0xe49   :  { %986 = vmatmul.mubr.msk.bf16.vlgmr.msra.gmra.mrb[12].mxu1 %vm221_vm4, %v581_v25 }
 0xe4a   :  { %998 = vmatpush3.bf16.msra.mxu1 %v1118_v3  ;;  %1001 = vmatprep.mubr.msk.bf16.mxu1 %vm1086_vm0, %v1085_v2  ;;  %vm851_vm0 = vcmask 259076  }
 0xe4b   :  { %999 = vmatprep.subr.bf16.mxu1 %v1085_v2  ;;  %vm852_vm1 = vmor %vm851_vm0, %vm850_vm15 }
 0xe4e   :  { %1000 = vmatpush3.bf16.msra.mxu1 %v1130_v6 }
 0xf1c   :  { %v619_v26 = vpop.f32.mrb[12].mxu1 }
 0xf1d   :  { %v625_v27 = vadd.f32 %v1231_v17, %v619_v26  ;;  %v987_v28 = vpop.f32.mrb[13].mxu1 }
 0xf1e   :  { %v622_v29 = vpop.f32.mrb[14].mxu1 }
 0xf1f   :  { %1060 = vtanh.f32 %v625_v27  ;;  %v988_v30 = vpop.f32.mrb[15].mxu1  ;;  %v886_v32 = vmul.f32 -1.442695, %v625_v27 }
 0xf21   :  { %1062 = vpow2.f32 %v886_v32 }
 0xf29   :  { %v1061_v31 = vpop.eup %1060 }
 0xf2a   :  { %635 = vrot.lane.b32.xlu0 %v1061_v31, %s1087_s1 }
 0xf2b   :  { %v1063_v3 = vpop.eup %1062 }
 0xf2c   :  { %v629_v33 = vadd.f32 1.0, %v1063_v3 }
 0xf2e   :  { %1064 = vrcp.f32 %v629_v33 }
 0xf38   :  { %v1065_v35 = vpop.eup %1064 }
 0xf39   :  { %v633_v6 = vmul.f32 %v1065_v35, %v571_v18 }
 0xf9c   :  { %v636_v36 = vpop.permute.xlu0 %635 }
 0xf9d   :  { %v638_v2 = vmul.f32 %v1065_v35, %v636_v36 }
 0xf9f   :  { %640 = vrot.lane.b32.xlu1 %v638_v2, %s1088_s2 }
0x1011   :  { %v641_v37 = vpop.permute.xlu1 %640 }
0x1012   :  { %v643_v17 = vadd.f32 %v641_v37, %v633_v6 }
0x1014   :  { %1066 = vtanh.f32 %v643_v17 }
0x101e   :  { %v1067_v38 = vpop.eup %1066 }
0x101f   :  { %646 = vrot.lane.b32.xlu0 %v1067_v38, %s1087_s1 }
0x1091   :  { %v647_v40 = vpop.permute.xlu0 %646 }
0x1092   :  { %v649_v41 = vmul.f32 %v1065_v35, %v647_v40 }
0x1094   :  { %v650_v42 = vpack.c.bf16 %v649_v41, %v649_v41 }
0x1096   :  { %652 = vrot.lane.b32.xlu1 %v650_v42, %s1088_s2 }
0x1108   :  { %v653_v43 = vpop.permute.xlu1 %652 }
0x1109   :  { %994 = vmatmul.mubr.msk.bf16.vlgmr.msra.gmra.mrb[16].mxu0 %vm221_vm4, %v653_v43 }
0x11dc   :  { %v691_v44 = vpop.f32.mrb[16].mxu0 }
0x11dd   :  { %v697_v45 = vadd.f32 %v691_v44, %v1237_v20  ;;  %v995_v46 = vpop.f32.mrb[17].mxu0 }
0x11de   :  { %v694_v47 = vpop.f32.mrb[18].mxu0 }
0x11df   :  { %1068 = vtanh.f32 %v697_v45  ;;  %v996_v48 = vpop.f32.mrb[19].mxu0  ;;  %v888_v50 = vmul.f32 -1.442695, %v697_v45 }
0x11e1   :  { %1070 = vpow2.f32 %v888_v50 }
0x11e9   :  { %v1069_v49 = vpop.eup %1068 }
0x11ea   :  { %707 = vrot.lane.b32.xlu0 %v1069_v49, %s1087_s1 }
0x11eb   :  { %v1071_v51 = vpop.eup %1070 }
0x11ec   :  { %v701_v52 = vadd.f32 1.0, %v1071_v51 }
0x11ee   :  { %1072 = vrcp.f32 %v701_v52 }
0x11f8   :  { %v1073_v53 = vpop.eup %1072 }
0x11f9   :  { %v705_v56 = vmul.f32 %v1073_v53, %v643_v17 }
0x125c   :  { %v708_v54 = vpop.permute.xlu0 %707 }
0x125d   :  { %v710_v55 = vmul.f32 %v1073_v53, %v708_v54 }
0x125f   :  { %712 = vrot.lane.b32.xlu1 %v710_v55, %s1088_s2 }
0x12d1   :  { %v713_v57 = vpop.permute.xlu1 %712 }
0x12d2   :  { %v715_v20 = vadd.f32 %v713_v57, %v705_v56 }
0x12d4   :  { %1074 = vtanh.f32 %v715_v20 }
0x12de   :  { %v1075_v58 = vpop.eup %1074 }
0x12df   :  { %718 = vrot.lane.b32.xlu0 %v1075_v58, %s1087_s1 }
0x1351   :  { %v719_v60 = vpop.permute.xlu0 %718 }
0x1352   :  { %v721_v61 = vmul.f32 %v1073_v53, %v719_v60 }
0x1354   :  { %v722_v63 = vpack.c.bf16 %v721_v61, %v721_v61 }
0x1356   :  { %724 = vrot.lane.b32.xlu1 %v722_v63, %s1088_s2 }
0x13c8   :  { %v725_v0 = vpop.permute.xlu1 %724 }
0x13c9   :  { %1002 = vmatmul.mubr.msk.bf16.vlgmr.msra.gmra.mrb[16].mxu1 %vm221_vm4, %v725_v0 }
0x149c   :  { %v763_v1 = vpop.f32.mrb[16].mxu1 }
0x149d   :  { %v769_v4 = vadd.f32 %v1235_v19, %v763_v1  ;;  %v1003_v5 = vpop.f32.mrb[17].mxu1 }
0x149e   :  { %v766_v7 = vpop.f32.mrb[18].mxu1 }
0x149f   :  { %1076 = vtanh.f32 %v769_v4  ;;  %v1004_v8 = vpop.f32.mrb[19].mxu1  ;;  %v890_v12 = vmul.f32 -1.442695, %v769_v4 }
0x14a1   :  { %1078 = vpow2.f32 %v890_v12 }
0x14a9   :  { %v1077_v11 = vpop.eup %1076 }
0x14aa   :  { %779 = vrot.lane.b32.xlu0 %v1077_v11, %s1087_s1 }
0x14ab   :  { %v1079_v13 = vpop.eup %1078 }
0x14ac   :  { %v773_v14 = vadd.f32 1.0, %v1079_v13 }
0x14ae   :  { %799 = vrot.lane.b32.xlu0 %v1202_v62, %s1087_s1  ;;  %1080 = vrcp.f32 %v773_v14 }
0x14b2   :  { %811 = vrot.lane.b32.xlu0 %v649_v41, %s1087_s1 }
0x14b8   :  { %v1081_v15 = vpop.eup %1080 }
0x14b9   :  { %v777_v62 = vmul.f32 %v1081_v15, %v715_v20 }
0x151c   :  { %v780_v10 = vpop.permute.xlu0 %779 }
0x151d   :  { %v782_v19 = vmul.f32 %v1081_v15, %v780_v10 }
0x151f   :  { %784 = vrot.lane.b32.xlu1 %v782_v19, %s1088_s2 }
0x1520   :  { %v800_v24 = vpop.permute.xlu0 %799 }
0x1523   :  { %795 = vrot.lane.b32.xlu1 %v1163_v34, %s1088_s2  ;;  %v1090_v34 = vmov 1983009808  }
0x1524   :  { %v812_v26 = vpop.permute.xlu0 %811  ;;  %v833_v27 = vunpack.c.l.s4 %v1090_v34 }
0x1526   :  { %v834_v29 = vunpack.c.0.s8 %v833_v27 }
0x1527   :  { %807 = vrot.lane.b32.xlu1 %v1273_v23, %s1088_s2 }
0x152b   :  { %803 = vrot.lane.b32.xlu1 %v1243_v39, %s1089_s0  ;;  %v836_v39 = vshrl.u32 %v23_v9, 7 }
0x152d   :  { %v837_v35 = vsub.s32 %v834_v29, %v836_v39 }
0x1591   :  { %v785_v16 = vpop.permute.xlu1 %784 }
0x1592   :  { %v787_v18 = vadd.f32 %v785_v16, %v777_v62 }
0x1594   :  { %1082 = vtanh.f32 %v787_v18  ;;  %819 = vrot.lane.b32.xlu1 %v787_v18, %s1089_s0 }
0x1595   :  { %v796_v22 = vpop.permute.xlu1 %795 }
0x1596   :  { %v821_v30 = vsel %vm221_vm4, %v796_v22, %v800_v24 }
0x1599   :  { %v808_v25 = vpop.permute.xlu1 %807 }
0x159a   :  { %v826_v32 = vsel %vm221_vm4, %v808_v25, %v812_v26 }
0x159d   :  { %v804_v23 = vpop.permute.xlu1 %803 }
0x159e   :  { %v1083_v21 = vpop.eup %1082  ;;  %v823_v31 = vsel %vm822_vm11, %v821_v30, %v804_v23 }
0x159f   :  { %790 = vrot.lane.b32.xlu0 %v1083_v21, %s1087_s1  ;;  %v825_v2 = vsel %vm824_vm12, %v823_v31, %v1258_v59 }
0x15a3   :  { %815 = vrot.lane.b32.xlu0 %v721_v61, %s1089_s0 }
0x1606   :  { %v820_v6 = vpop.permute.xlu1 %819 }
0x1607   :  { %v845_v9 = vrot.slane %v820_v6, %v837_v35 }
0x1611   :  { %v791_v28 = vpop.permute.xlu0 %790 }
0x1612   :  { %v793_v3 = vmul.f32 %v1081_v15, %v791_v28 }
0x1615   :  { %v816_v33 = vpop.permute.xlu0 %815 }
0x1616   :  { %v827_v36 = vsel %vm822_vm11, %v826_v32, %v816_v33 }
0x1617   :  { %v828_v37 = vsel %vm824_vm12, %v827_v36, %v793_v3 }
0x1618   :  { %v831_v17 = vcombine.low %v825_v2, %v828_v37 }
0x161a   :  { %v838_v38 = vrot.slane %v831_v17, %v837_v35 }
0x161c   :  { %v846_v40 = vcombine.low %v838_v38, %v845_v9 }
0x161e   :  { %853 = vst.msk [vmem:[%s1318_s3] sm:$0x3f] %vm852_vm1, %v846_v40 }

</bundles_post_ra>
